<compile_context>
chip_gen: v6e
topology: v6e:2x2x1
jax: 0.10.0
libtpu: 0.0.40
codegen_flags: <defaults>
</compile_context>

<pallas_src>
import jax
import jax.numpy as jnp
import numpy as np
from jax.experimental import pallas as pl
from jax.experimental.pallas import tpu as pltpu

INPUT_DIM = 16    # env.observation_space.shape[0] (synthetic Gridworld obs)
HIDDEN = 128
N_ACTIONS = 6
PAD_OUT = 8       # actions padded 6 -> 8 (was 128)


def policy_kernel(x_ref, w1_ref, b1_ref, w2_ref, b2_ref, w3_ref, b3_ref, out_ref):
    x = x_ref[...].astype(jnp.bfloat16)              # (TILE_B, INPUT_DIM)

    # affine1 + ReLU  (bf16 MXU inputs, f32 accumulation)
    h1 = jnp.dot(x, w1_ref[...], preferred_element_type=jnp.float32) + b1_ref[...]
    h1 = jnp.maximum(h1, 0.0)

    # affine2 + ReLU
    h2 = jnp.dot(h1.astype(jnp.bfloat16), w2_ref[...],
                 preferred_element_type=jnp.float32) + b2_ref[...]
    h2 = jnp.maximum(h2, 0.0)

    # output layer (8-lane padded) + softmax over lanes
    logits = jnp.dot(h2.astype(jnp.bfloat16), w3_ref[...],
                     preferred_element_type=jnp.float32) + b3_ref[...]
    m = jnp.max(logits, axis=-1, keepdims=True)      # padded lanes hold -1e30 bias
    e = jnp.exp(logits - m)                          # padded lanes exp to 0
    denom = jnp.sum(e, axis=-1, keepdims=True)
    out_ref[...] = (e / denom).astype(out_ref.dtype)  # exact divide; bf16 store

    # TODO(synk): fuse Gumbel-max categorical sampling + log-prob here for the
    # tiny-batch rollout case instead of returning the probability rows.


def _round_up(n, m):
    return -(-n // m) * m


def _choose_tiles(batch, tile_b):
    """Pick (tile, padded_batch); 16-row alignment (bf16 sublane packing) and
    at least 2 grid steps whenever the batch is big enough (v7x megacore)."""
    padded = _round_up(max(batch, 1), 16)
    if padded <= 32:
        return padded, padded                         # single tiny grid step
    tb = min(_round_up(tile_b, 16), _round_up(pl.cdiv(padded, 2), 16))
    padded_b = _round_up(padded, tb)
    return tb, padded_b


def policy_forward(x, params, *, tile_b=2048):
    """x: (B, INPUT_DIM) float32 -> (B, N_ACTIONS) action probabilities (bf16)."""
    w1, b1, w2, b2, w3p, b3p = params
    B = x.shape[0]

    tb, padded_b = _choose_tiles(B, tile_b)
    if padded_b != B:
        x = jnp.pad(x, ((0, padded_b - B), (0, 0)))

    grid = (padded_b // tb,)

    def const_spec(shape):
        return pl.BlockSpec(shape, lambda i, _n=len(shape): (0,) * _n)

    flops = 2 * padded_b * (INPUT_DIM * HIDDEN + HIDDEN * HIDDEN + HIDDEN * PAD_OUT)
    bytes_accessed = int(
        padded_b * INPUT_DIM * 4                                         # x (f32)
        + sum(int(np.prod(p.shape)) * p.dtype.itemsize for p in params)  # weights
        + padded_b * PAD_OUT * 2                                         # out (bf16)
    )

    out = pl.pallas_call(
        policy_kernel,
        out_shape=jax.ShapeDtypeStruct((padded_b, PAD_OUT), jnp.bfloat16),
        grid=grid,
        in_specs=[
            pl.BlockSpec((tb, INPUT_DIM), lambda i: (i, 0)),   # x tile
            const_spec(w1.shape), const_spec(b1.shape),        # resident weights
            const_spec(w2.shape), const_spec(b2.shape),
            const_spec(w3p.shape), const_spec(b3p.shape),
        ],
        out_specs=pl.BlockSpec((tb, PAD_OUT), lambda i: (i, 0)),
        compiler_params=pltpu.CompilerParams(
            dimension_semantics=("parallel",)),
        cost_estimate=pl.CostEstimate(
            flops=flops,
            transcendentals=padded_b * PAD_OUT,
            bytes_accessed=bytes_accessed),
    )(x, w1, b1, w2, b2, w3p, b3p)

    return out[:B, :N_ACTIONS]


def init_params(key):
    """nn.Linear-style init: U(-1/sqrt(fan_in), +1/sqrt(fan_in)).
    Weights stored transposed (in, out); w3/b3 padded to PAD_OUT output lanes."""
    ks = jax.random.split(key, 6)

    def linear(kw, kb, fan_in, fan_out):
        bound = 1.0 / np.sqrt(fan_in)
        w = jax.random.uniform(kw, (fan_in, fan_out), jnp.float32, -bound, bound)
        b = jax.random.uniform(kb, (1, fan_out), jnp.float32, -bound, bound)
        return w, b

    w1, b1 = linear(ks[0], ks[1], INPUT_DIM, HIDDEN)
    w2, b2 = linear(ks[2], ks[3], HIDDEN, HIDDEN)
    w3, b3 = linear(ks[4], ks[5], HIDDEN, N_ACTIONS)

    # Lane padding of the output layer: zero weight columns, large finite
    # negative f32 bias so padded logits exp to 0 under max-subtraction.
    w3p = jnp.zeros((HIDDEN, PAD_OUT), jnp.float32).at[:, :N_ACTIONS].set(w3)
    b3p = jnp.full((1, PAD_OUT), -1e30, jnp.float32).at[:, :N_ACTIONS].set(b3)

    return (w1.astype(jnp.bfloat16), b1,
            w2.astype(jnp.bfloat16), b2,
            w3p.astype(jnp.bfloat16), b3p)


def policy_forward_ref(x, params):
    """Pure-JAX reference mirroring the kernel's bf16 rounding points."""
    w1, b1, w2, b2, w3p, b3p = params
    xf = x.astype(jnp.bfloat16).astype(jnp.float32)
    h1 = jax.nn.relu(xf @ w1.astype(jnp.float32) + b1)
    h2 = jax.nn.relu(h1.astype(jnp.bfloat16).astype(jnp.float32)
                     @ w2.astype(jnp.float32) + b2)
    logits = (h2.astype(jnp.bfloat16).astype(jnp.float32)
              @ w3p.astype(jnp.float32)[:, :N_ACTIONS] + b3p[:, :N_ACTIONS])
    return jax.nn.softmax(logits, axis=1)


if __name__ == "__main__":
    key = jax.random.PRNGKey(0)
    k_params, k_x = jax.random.split(key)

    params = init_params(k_params)

    # Small batch (single grid step), mirrors a rollout of 8 observations.
    x = jax.random.normal(k_x, (8, INPUT_DIM), dtype=jnp.float32)
    probs = jax.block_until_ready(policy_forward(x, params))
    ref = policy_forward_ref(x, params)
    assert probs.shape == (8, N_ACTIONS)
    np.testing.assert_allclose(np.asarray(probs, dtype=np.float32),
                               np.asarray(ref), rtol=3e-2, atol=1e-2)
    np.testing.assert_allclose(np.asarray(probs, dtype=np.float32).sum(axis=1),
                               np.ones(8), atol=2e-2)

    # Exercise the batch grid + padding path (tile 16 -> grid of 3 steps).
    x2 = jax.random.normal(jax.random.PRNGKey(1), (40, INPUT_DIM), dtype=jnp.float32)
    probs2 = jax.block_until_ready(policy_forward(x2, params, tile_b=16))
    ref2 = policy_forward_ref(x2, params)
    np.testing.assert_allclose(np.asarray(probs2, dtype=np.float32),
                               np.asarray(ref2), rtol=3e-2, atol=1e-2)

    # Larger batch: default tiling, >= 2 grid steps (both v7x TCs busy).
    x3 = jax.random.normal(jax.random.PRNGKey(2), (4096, INPUT_DIM), dtype=jnp.float32)
    probs3 = jax.block_until_ready(policy_forward(x3, params))
    ref3 = policy_forward_ref(x3, params)
    np.testing.assert_allclose(np.asarray(probs3, dtype=np.float32),
                               np.asarray(ref3), rtol=3e-2, atol=1e-2)

    print("KERNEL_OK")
</pallas_src>

<mosaic_0001>
module attributes {stable_mosaic.version = 11 : i64} {
  func.func @policy_kernel(%arg0: i32, %arg1: memref<16x16xf32, #tpu.memory_space<vmem>>, %arg2: memref<16x128xbf16, #tpu.memory_space<vmem>>, %arg3: memref<1x128xf32, #tpu.memory_space<vmem>>, %arg4: memref<128x128xbf16, #tpu.memory_space<vmem>>, %arg5: memref<1x128xf32, #tpu.memory_space<vmem>>, %arg6: memref<128x8xbf16, #tpu.memory_space<vmem>>, %arg7: memref<1x8xf32, #tpu.memory_space<vmem>>, %arg8: memref<16x8xbf16, #tpu.memory_space<vmem>>) attributes {dimension_semantics = [#tpu.dimension_semantics<parallel>], iteration_bounds = array<i64: 1>, scalar_prefetch = 0 : i64, scratch_operands = 0 : i64, tpu.core_type = #tpu.core_type<tc>, window_params = [{transform_indices = @transform_0, window_bounds = array<i64: 16, 16>}, {pipeline_mode = #tpu.pipeline_mode<synchronous>, transform_indices = @transform_1, window_bounds = array<i64: 16, 128>}, {pipeline_mode = #tpu.pipeline_mode<synchronous>, transform_indices = @transform_2, window_bounds = array<i64: 1, 128>}, {pipeline_mode = #tpu.pipeline_mode<synchronous>, transform_indices = @transform_3, window_bounds = array<i64: 128, 128>}, {pipeline_mode = #tpu.pipeline_mode<synchronous>, transform_indices = @transform_4, window_bounds = array<i64: 1, 128>}, {pipeline_mode = #tpu.pipeline_mode<synchronous>, transform_indices = @transform_5, window_bounds = array<i64: 128, 8>}, {pipeline_mode = #tpu.pipeline_mode<synchronous>, transform_indices = @transform_6, window_bounds = array<i64: 1, 8>}, {transform_indices = @transform_7, window_bounds = array<i64: 16, 8>}]} {
    %c0 = arith.constant 0 : index
    %c0_0 = arith.constant 0 : index
    %0 = vector.load %arg1[%c0, %c0_0] : memref<16x16xf32, #tpu.memory_space<vmem>>, vector<16x16xf32>
    %1 = arith.truncf %0 : vector<16x16xf32> to vector<16x16xbf16>
    %c0_1 = arith.constant 0 : index
    %c0_2 = arith.constant 0 : index
    %2 = vector.load %arg2[%c0_1, %c0_2] : memref<16x128xbf16, #tpu.memory_space<vmem>>, vector<16x128xbf16>
    %cst = arith.constant dense<0.000000e+00> : vector<16x128xf32>
    %3 = tpu.matmul %1, %2, %cst {dimension_numbers = #tpu.dot_dimension_numbers<[1], [0], [0], [1], [0, 0, 1, 1], [], []>} : vector<16x16xbf16>, vector<16x128xbf16>, vector<16x128xf32> -> vector<16x128xf32>
    %c0_3 = arith.constant 0 : index
    %c0_4 = arith.constant 0 : index
    %4 = vector.load %arg3[%c0_3, %c0_4] : memref<1x128xf32, #tpu.memory_space<vmem>>, vector<1x128xf32>
    %5 = vector.broadcast %4 : vector<1x128xf32> to vector<16x128xf32>
    %6 = arith.addf %3, %5 : vector<16x128xf32>
    %cst_5 = arith.constant 0.000000e+00 : f32
    %7 = vector.broadcast %cst_5 : f32 to vector<16x128xf32>
    %8 = arith.maximumf %6, %7 : vector<16x128xf32>
    %9 = arith.truncf %8 : vector<16x128xf32> to vector<16x128xbf16>
    %c0_6 = arith.constant 0 : index
    %c0_7 = arith.constant 0 : index
    %10 = vector.load %arg4[%c0_6, %c0_7] : memref<128x128xbf16, #tpu.memory_space<vmem>>, vector<128x128xbf16>
    %cst_8 = arith.constant dense<0.000000e+00> : vector<16x128xf32>
    %11 = tpu.matmul %9, %10, %cst_8 {dimension_numbers = #tpu.dot_dimension_numbers<[1], [0], [0], [1], [0, 0, 1, 1], [], []>} : vector<16x128xbf16>, vector<128x128xbf16>, vector<16x128xf32> -> vector<16x128xf32>
    %c0_9 = arith.constant 0 : index
    %c0_10 = arith.constant 0 : index
    %12 = vector.load %arg5[%c0_9, %c0_10] : memref<1x128xf32, #tpu.memory_space<vmem>>, vector<1x128xf32>
    %13 = vector.broadcast %12 : vector<1x128xf32> to vector<16x128xf32>
    %14 = arith.addf %11, %13 : vector<16x128xf32>
    %cst_11 = arith.constant 0.000000e+00 : f32
    %15 = vector.broadcast %cst_11 : f32 to vector<16x128xf32>
    %16 = arith.maximumf %14, %15 : vector<16x128xf32>
    %17 = arith.truncf %16 : vector<16x128xf32> to vector<16x128xbf16>
    %c0_12 = arith.constant 0 : index
    %c0_13 = arith.constant 0 : index
    %18 = vector.load %arg6[%c0_12, %c0_13] : memref<128x8xbf16, #tpu.memory_space<vmem>>, vector<128x8xbf16>
    %cst_14 = arith.constant dense<0.000000e+00> : vector<16x8xf32>
    %19 = tpu.matmul %17, %18, %cst_14 {dimension_numbers = #tpu.dot_dimension_numbers<[1], [0], [0], [1], [0, 0, 1, 1], [], []>} : vector<16x128xbf16>, vector<128x8xbf16>, vector<16x8xf32> -> vector<16x8xf32>
    %c0_15 = arith.constant 0 : index
    %c0_16 = arith.constant 0 : index
    %20 = vector.load %arg7[%c0_15, %c0_16] : memref<1x8xf32, #tpu.memory_space<vmem>>, vector<1x8xf32>
    %21 = vector.broadcast %20 : vector<1x8xf32> to vector<16x8xf32>
    %22 = arith.addf %19, %21 : vector<16x8xf32>
    %cst_17 = arith.constant dense<0xFF800000> : vector<16xf32>
    %23 = vector.multi_reduction <maximumf>, %22, %cst_17 [1] : vector<16x8xf32> to vector<16xf32>
    %24 = vector.shape_cast %23 : vector<16xf32> to vector<16x1xf32>
    %25 = vector.broadcast %24 : vector<16x1xf32> to vector<16x8xf32>
    %26 = arith.subf %22, %25 : vector<16x8xf32>
    %27 = math.exp %26 : vector<16x8xf32>
    %cst_18 = arith.constant dense<0.000000e+00> : vector<16xf32>
    %28 = vector.multi_reduction <add>, %27, %cst_18 [1] : vector<16x8xf32> to vector<16xf32>
    %29 = vector.shape_cast %28 : vector<16xf32> to vector<16x1xf32>
    %30 = vector.broadcast %29 : vector<16x1xf32> to vector<16x8xf32>
    %31 = arith.divf %27, %30 : vector<16x8xf32>
    %32 = arith.truncf %31 : vector<16x8xf32> to vector<16x8xbf16>
    %c0_19 = arith.constant 0 : index
    %c0_20 = arith.constant 0 : index
    %33 = vector.load %arg8[%c0_19, %c0_20] : memref<16x8xbf16, #tpu.memory_space<vmem>>, vector<16x8xbf16>
    tpu.vector_store %arg8[%c0_19, %c0_20], %32 {strides = array<i32>} : memref<16x8xbf16, #tpu.memory_space<vmem>>, vector<16x8xbf16>,
    return
  }
  func.func @transform_0(%arg0: i32) -> (i32, i32) {
    %c0_i32 = arith.constant 0 : i32
    %c0_i32_0 = arith.constant 0 : i32
    return %arg0, %c0_i32 : i32, i32
  }
  func.func @transform_1(%arg0: i32) -> (i32, i32) {
    %c0_i32 = arith.constant 0 : i32
    %c0_i32_0 = arith.constant 0 : i32
    %c0_i32_1 = arith.constant 0 : i32
    return %c0_i32, %c0_i32_0 : i32, i32
  }
  func.func @transform_2(%arg0: i32) -> (i32, i32) {
    %c0_i32 = arith.constant 0 : i32
    %c0_i32_0 = arith.constant 0 : i32
    %c0_i32_1 = arith.constant 0 : i32
    return %c0_i32, %c0_i32_0 : i32, i32
  }
  func.func @transform_3(%arg0: i32) -> (i32, i32) {
    %c0_i32 = arith.constant 0 : i32
    %c0_i32_0 = arith.constant 0 : i32
    %c0_i32_1 = arith.constant 0 : i32
    return %c0_i32, %c0_i32_0 : i32, i32
  }
  func.func @transform_4(%arg0: i32) -> (i32, i32) {
    %c0_i32 = arith.constant 0 : i32
    %c0_i32_0 = arith.constant 0 : i32
    %c0_i32_1 = arith.constant 0 : i32
    return %c0_i32, %c0_i32_0 : i32, i32
  }
  func.func @transform_5(%arg0: i32) -> (i32, i32) {
    %c0_i32 = arith.constant 0 : i32
    %c0_i32_0 = arith.constant 0 : i32
    %c0_i32_1 = arith.constant 0 : i32
    return %c0_i32, %c0_i32_0 : i32, i32
  }
  func.func @transform_6(%arg0: i32) -> (i32, i32) {
    %c0_i32 = arith.constant 0 : i32
    %c0_i32_0 = arith.constant 0 : i32
    %c0_i32_1 = arith.constant 0 : i32
    return %c0_i32, %c0_i32_0 : i32, i32
  }
  func.func @transform_7(%arg0: i32) -> (i32, i32) {
    %c0_i32 = arith.constant 0 : i32
    %c0_i32_0 = arith.constant 0 : i32
    return %arg0, %c0_i32 : i32, i32
  }
}

</mosaic_0001>

<bundles_post_ra>
// kernel: tpu_custom_call.1
= control target key start
LH: loop header
LB: loop body
LE: loop exit
PB: predicated region body
PF: predicated region fallthrough
CT: control target
= control target key end

     0   :  { %12 = vsyncpa [#allocation3], 0  ;;  %s694_s0 = inlined_call_operand.hbm [shape: f32[16,16], index: 0, kind: input, shape index: {}]   ;;  %s695_s1 = inlined_call_operand.vmem [shape: bf16[16,128], index: 1, kind: input, shape index: {}]   ;;  %s696_s2 = inlined_call_operand.vmem [shape: f32[1,128], index: 2, kind: input, shape index: {}]   ;;  %s697_s3 = inlined_call_operand.vmem [shape: bf16[128,128], index: 3, kind: input, shape index: {}]   ;;  %s698_s4 = inlined_call_operand.hbm [shape: f32[1,128], index: 4, kind: input, shape index: {}]   ;;  %s699_s5 = inlined_call_operand.vmem [shape: bf16[128,8], index: 5, kind: input, shape index: {}]   ;;  %s700_s6 = inlined_call_operand.vmem [shape: f32[1,8], index: 6, kind: input, shape index: {}]   ;;  %s701_s7 = inlined_call_operand.vmem [shape: bf16[16,8], index: 7, kind: output, shape index: {}]  }
   0x1   :  { %13 = vsyncpa [#allocation5], 0  ;;  %s552_s24 = smov [#allocation2]  }
   0x2   :  { %s19_s25 = sshll.u32 %s552_s24, 4  ;;  %s20_s25 = int_to_ptr.vmem [resolvable:$true] %s19_s25 }
   0x3   :  { %s516_s26 = scalar_lea.vmem %s20_s25, 256  ;;  %p521_p1 = scmp.lt.s32.totalorder %s20_s25, %s20_s25 }
   0x4   :  { %p517_p0 = scmp.ne.s32.totalorder %s20_s25, %s516_s26  ;;  %p522_p2 = scmp.lt.s32.totalorder %s516_s26, %s516_s26 }
   0x6   :  { %p523_p3 = por %p522_p2, %p521_p1 }
   0x8   :  { %p524_p4 = pnand %p523_p3, %p517_p0 }
   0xa   :  { %527 = shalt.err (!%p524_p4)
}
   0xb   :  { %s553_s27 = smov 128   ;;  %s554_s28 = smov 8  }
   0xc   :  { %25 = dma.hbm_to_vmem [thread:$0]  %s694_s0, 256, %s20_s25, [#allocation3], %s553_s27, %s553_s27, %s554_s28  }
   0xd   :  { %s555_s8 = smov [#allocation4]  }
   0xe   :  { %s38_s9 = sshll.u32 %s555_s8, 4  ;;  %s39_s9 = int_to_ptr.vmem [resolvable:$true] %s38_s9 }
   0xf   :  { %s536_s10 = scalar_lea.vmem %s39_s9, 16  ;;  %s540_s11 = scalar_lea.vmem %s39_s9, 32 }
  0x10   :  { %p537_p5 = scmp.ne.s32.totalorder %s39_s9, %s536_s10  ;;  %p541_p6 = scmp.lt.s32.totalorder %s39_s9, %s39_s9 }
  0x11   :  { %p542_p7 = scmp.lt.s32.totalorder %s540_s11, %s536_s10 }
  0x13   :  { %p543_p8 = por %p542_p7, %p541_p6 }
  0x15   :  { %p544_p9 = pnand %p543_p8, %p537_p5 }
  0x17   :  { %547 = shalt.err (!%p544_p9)
}
  0x18   :  { %41 = dma.hbm_to_vmem [thread:$0]  %s698_s4, 16, %s39_s9, [#allocation5]  }
  0x19   :  { %548 = dma.done.wait [#allocation3], 256  }
  0x1a   :  { %549 = vsyncadd [#allocation3], 4294967040 }
  0x1b   :  { %550 = dma.done.wait [#allocation5], 16  }
  0x1c   :  { %551 = vsyncadd [#allocation5], 4294967280  ;;  %v556_v0 = vmov 0.0   ;;  %vm557_vm0 = vmmov 0   ;;  %v483_v1 = vld [vmem:[%s695_s1] sm:$0xff]   ;;  %v54_v3 = vld [vmem:[#allocation2 + $0x8] sm:$0xff] }
  0x1d   :  { %431 = vmatprep.subr.bf16.mxu0 %v556_v0  ;;  %433 = vmatprep.mubr.msk.bf16.mxu0 %vm557_vm0, %v556_v0  ;;  %v53_v2 = vld [vmem:[#allocation2] sm:$0xff]  ;;  %vm71_vm1 = vcmask 130048   ;;  %v484_v5 = vld [vmem:[%s697_s3 + $0x38] sm:$0xff]   ;;  %v485_v6 = vld [vmem:[%s697_s3 + $0x30] sm:$0xff]   ;;  %vm346_vm2 = vcmask 64512   ;;  %vm377_vm3 = vcmask 60416  }
  0x1e   :  { %437 = vmatprep.subr.bf16.mxu1 %v556_v0  ;;  %453 = vmatprep.mubr.msk.bf16.mxu1 %vm557_vm0, %v556_v0  ;;  %v55_v4 = vpack.c.bf16 %v54_v3, %v53_v2  ;;  %v486_v7 = vld [vmem:[%s697_s3 + $0x28] sm:$0xff]   ;;  %v487_v8 = vld [vmem:[%s697_s3 + $0x20] sm:$0xff]   ;;  %v488_v9 = vld [vmem:[%s697_s3 + $0x18] sm:$0xff]  }
  0x1f   :  { %432 = vmatpush3.bf16.msra.mxu0 %v483_v1  ;;  %438 = vmatpush3.bf16.msra.mxu1 %v484_v5  ;;  %v489_v10 = vld [vmem:[%s697_s3 + $0x10] sm:$0xff]   ;;  %v490_v11 = vld [vmem:[%s697_s3 + $0x8] sm:$0xff]   ;;  %v491_v12 = vld [vmem:[%s697_s3] sm:$0xff]  }
  0x20   :  { %457 = vmatprep.subr.bf16.mxu0 %v556_v0  ;;  %439 = vmatprep.subr.bf16.mxu1 %v556_v0  ;;  %v492_v13 = vld [vmem:[%s699_s5 + $0x38] sm:$0xff]   ;;  %v493_v14 = vld [vmem:[%s699_s5 + $0x30] sm:$0xff]   ;;  %v494_v15 = vld [vmem:[%s699_s5 + $0x28] sm:$0xff]  }
  0x21   :  { %v495_v16 = vld [vmem:[%s699_s5 + $0x20] sm:$0xff]   ;;  %v496_v17 = vld [vmem:[%s699_s5 + $0x18] sm:$0xff]   ;;  %v497_v28 = vld [vmem:[%s699_s5 + $0x10] sm:$0xff]  }
  0x22   :  { %434 = vmatmul.mubr.msk.bf16.vlgmr.msra.gmra.mxu0 %vm71_vm1, %v55_v4  ;;  %v386_v18 = vld [vmem:[%s696_s2] ss:$0 sm:$0xff]  ;;  %v498_v29 = vld [vmem:[%s699_s5 + $0x8] sm:$0xff]   ;;  %v389_v31 = vld [vmem:[#allocation4] ss:$0 sm:$0xff] }
  0x23   :  { %473 = vmatprep.mubr.msk.bf16.mxu0 %vm557_vm0, %v556_v0  ;;  %440 = vmatpush3.bf16.msra.mxu1 %v485_v6  ;;  %v499_v30 = vld [vmem:[%s699_s5] sm:$0xff]  }
  0x24   :  { %441 = vmatprep.subr.bf16.mxu1 %v556_v0  ;;  %458 = vmatpush3.bf16.msra.mxu0 %v492_v13  ;;  %v398_v41 = vld [vmem:[%s700_s6] ss:$0 sm:$0xff] }
  0x25   :  { %459 = vmatprep.subr.bf16.mxu0 %v556_v0 }
  0x27   :  { %442 = vmatpush3.bf16.msra.mxu1 %v486_v7 }
  0x28   :  { %443 = vmatprep.subr.bf16.mxu1 %v556_v0  ;;  %460 = vmatpush3.bf16.msra.mxu0 %v493_v14 }
  0x29   :  { %461 = vmatprep.subr.bf16.mxu0 %v556_v0 }
  0x2b   :  { %444 = vmatpush3.bf16.msra.mxu1 %v487_v8 }
  0x2c   :  { %445 = vmatprep.subr.bf16.mxu1 %v556_v0  ;;  %462 = vmatpush3.bf16.msra.mxu0 %v494_v15 }
  0x2d   :  { %463 = vmatprep.subr.bf16.mxu0 %v556_v0 }
  0x2f   :  { %446 = vmatpush3.bf16.msra.mxu1 %v488_v9 }
  0x30   :  { %447 = vmatprep.subr.bf16.mxu1 %v556_v0  ;;  %464 = vmatpush3.bf16.msra.mxu0 %v495_v16 }
  0x31   :  { %465 = vmatprep.subr.bf16.mxu0 %v556_v0 }
  0x33   :  { %448 = vmatpush3.bf16.msra.mxu1 %v489_v10 }
  0x34   :  { %449 = vmatprep.subr.bf16.mxu1 %v556_v0  ;;  %466 = vmatpush3.bf16.msra.mxu0 %v496_v17 }
  0x35   :  { %467 = vmatprep.subr.bf16.mxu0 %v556_v0 }
  0x37   :  { %450 = vmatpush3.bf16.msra.mxu1 %v490_v11 }
  0x38   :  { %451 = vmatprep.subr.bf16.mxu1 %v556_v0  ;;  %468 = vmatpush3.bf16.msra.mxu0 %v497_v28 }
  0x39   :  { %469 = vmatprep.subr.bf16.mxu0 %v556_v0 }
  0x3b   :  { %452 = vmatpush3.bf16.msra.mxu1 %v491_v12 }
  0x3c   :  { %470 = vmatpush3.bf16.msra.mxu0 %v498_v29 }
  0x3d   :  { %471 = vmatprep.subr.bf16.mxu0 %v556_v0 }
  0x40   :  { %472 = vmatpush3.bf16.msra.mxu0 %v499_v30 }
  0xe2   :  { %v109_v19 = vpop.f32.mrf.mxu0 }
  0xe3   :  { %v110_v21 = vadd.f32 %v386_v18, %v109_v19 }
  0xe4   :  { %v435_v20 = vpop.f32.mrf.mxu0 }
  0xe5   :  { %v116_v25 = vmax.f32 %v110_v21, 0.0 }
  0xe6   :  { %v112_v22 = vpop.f32.mrf.mxu0 }
  0xe7   :  { %v113_v23 = vadd.f32 %v386_v18, %v112_v22 }
  0xe8   :  { %v436_v24 = vpop.f32.mrf.mxu0 }
  0xe9   :  { %v117_v26 = vmax.f32 %v113_v23, 0.0 }
  0xeb   :  { %v118_v27 = vpack.c.bf16 %v117_v26, %v116_v25 }
  0xed   :  { %454 = vmatmul.mubr.bf16.vlgmr.msra.gmra.mxu1 %v118_v27 }
 0x1ad   :  { %v224_v32 = vpop.f32.mrf.mxu1 }
 0x1ae   :  { %v225_v34 = vadd.f32 %v389_v31, %v224_v32 }
 0x1af   :  { %v455_v33 = vpop.f32.mrf.mxu1 }
 0x1b0   :  { %v231_v38 = vmax.f32 %v225_v34, 0.0 }
 0x1b1   :  { %v227_v35 = vpop.f32.mrf.mxu1 }
 0x1b2   :  { %v228_v36 = vadd.f32 %v389_v31, %v227_v35 }
 0x1b3   :  { %v456_v37 = vpop.f32.mrf.mxu1 }
 0x1b4   :  { %v232_v39 = vmax.f32 %v228_v36, 0.0 }
 0x1b6   :  { %v233_v40 = vpack.c.bf16 %v232_v39, %v231_v38 }
 0x1b8   :  { %474 = vmatmul.mubr.bf16.vlgmr.msra.gmra.mxu0 %v233_v40 }
 0x278   :  { %v339_v42 = vpop.f32.mrf.mxu0 }
 0x279   :  { %v340_v43 = vadd.f32 %v398_v41, %v339_v42 }
 0x27a   :  { %v475_v44 = vpop.f32.mrf.mxu0 }
 0x27b   :  { %v347_v45 = vsel %vm346_vm2, %v340_v43, -inf }
 0x27c   :  { %348 = vmax.xlane.f32.xlu0 %v347_v45  ;;  %v342_v46 = vpop.f32.mrf.mxu0 }
 0x27d   :  { %v343_v47 = vadd.f32 %v398_v41, %v342_v46 }
 0x27e   :  { %v476_v48 = vpop.f32.mrf.mxu0 }
 0x27f   :  { %v350_v49 = vsel %vm346_vm2, %v343_v47, -inf }
 0x280   :  { %351 = vmax.xlane.f32.xlu0 %v350_v49 }
 0x305   :  { %v349_v50 = vpop.xlane.xlu0 %348 }
 0x306   :  { %v353_v51 = vsub.f32 %v340_v43, %v349_v50 }
 0x308   :  { %v355_v52 = vmul.f32 1.442695, %v353_v51 }
 0x309   :  { %v352_v53 = vpop.xlane.xlu0 %351 }
 0x30a   :  { %500 = vpow2.f32 %v355_v52  ;;  %v354_v54 = vsub.f32 %v343_v47, %v352_v53 }
 0x30c   :  { %v357_v55 = vmul.f32 1.442695, %v354_v54 }
 0x30e   :  { %502 = vpow2.f32 %v357_v55 }
 0x317   :  { %v501_v56 = vpop.eup %500 }
 0x318   :  { %v359_v57 = vsel %vm346_vm2, %v501_v56, 0.0 }
 0x319   :  { %360 = vadd.xlane.f32.xlu1 %v359_v57 }
 0x31b   :  { %v503_v58 = vpop.eup %502 }
 0x31c   :  { %v362_v59 = vsel %vm346_vm2, %v503_v58, 0.0 }
 0x31d   :  { %363 = vadd.xlane.f32.xlu1 %v362_v59 }
 0x3a2   :  { %v361_v60 = vpop.xlane.xlu1 %360 }
 0x3a3   :  { %504 = vrcp.f32 %v361_v60 }
 0x3a6   :  { %v364_v61 = vpop.xlane.xlu1 %363 }
 0x3a7   :  { %506 = vrcp.f32 %v364_v61 }
 0x3b0   :  { %v505_v62 = vpop.eup %504 }
 0x3b1   :  { %v366_v63 = vmul.f32 %v505_v62, %v501_v56 }
 0x3b3   :  { %v409_v0 = vpack.c.bf16 %v366_v63, %v366_v63 }
 0x3b4   :  { %v507_v1 = vpop.eup %506 }
 0x3b5   :  { %378 = vst.msk [vmem:[%s701_s7] sm:$0xf] %vm377_vm3, %v409_v0  ;;  %v368_v2 = vmul.f32 %v507_v1, %v503_v58 }
 0x3b7   :  { %v410_v3 = vpack.c.bf16 %v368_v2, %v368_v2 }
 0x3b9   :  { %379 = vst.msk [vmem:[%s701_s7 + $0x4] sm:$0xf] %vm377_vm3, %v410_v3 }
 0x3ba   :  { %384 = vsyncpa [#allocation3], 1 }
 0x3bb   :  { %385 = vsyncpa [#allocation5], 1 }

</bundles_post_ra>
